<compile_context>
chip_gen: v7x
topology: tpu7x:2x2x1
jax: 0.10.0
libtpu: 0.0.40
codegen_flags: <defaults>
</compile_context>

<pallas_src>
from functools import partial

import jax
import jax.numpy as jnp
from jax.experimental import pallas as pl
from jax.experimental.pallas import tpu as pltpu


# ----------------------------------------------------------------------------
# Fused kernel: image-aware smoothness loss over both flow channels
# ----------------------------------------------------------------------------
def _smooth_loss_kernel(flow_ref, img_ref, mask_ref, out_ref, *, H, W):
    # flow_ref: (N, 2, H*W)   img_ref: (N, C, H*W)   mask_ref: (N, 1, H*W)   (VMEM, f32)
    # out_ref : (1, 1)        scalar loss                                     (SMEM, f32)
    HW = H * W
    N = flow_ref.shape[0]

    flow = flow_ref[...].astype(jnp.float32)
    img = img_ref[...].astype(jnp.float32)
    mask = mask_ref[...].astype(jnp.float32)

    # ---- gradient along H (PyTorch dim 2): pairs (k, k+W), k in [0, (H-1)*W) ----
    mx = mask[:, :, W:]                                          # backmask[:, :, 1:, :]
    igx = (img[:, :, : HW - W] - img[:, :, W:]) * mx             # (N, C, (H-1)*W)
    wx = jnp.exp(-jnp.mean(jnp.abs(igx), axis=1, keepdims=True))  # (N, 1, (H-1)*W)
    fgx = (flow[:, :, : HW - W] - flow[:, :, W:]) * mx           # (N, 2, (H-1)*W)
    sum_x = jnp.sum(jnp.abs(fgx * wx))

    # ---- gradient along W (PyTorch dim 3): pairs (k, k+1), valid iff k % W != W-1 ----
    my = mask[:, :, 1:]                                          # backmask[:, :, :, 1:]
    igy = (img[:, :, : HW - 1] - img[:, :, 1:]) * my             # (N, C, HW-1)
    wy = jnp.exp(-jnp.mean(jnp.abs(igy), axis=1, keepdims=True))  # (N, 1, HW-1)
    fgy = (flow[:, :, : HW - 1] - flow[:, :, 1:]) * my           # (N, 2, HW-1)

    k = jax.lax.broadcasted_iota(jnp.int32, (1, 1, HW - 1), 2)
    if (W & (W - 1)) == 0:                     # power-of-two fast path (bitwise AND)
        col = jnp.bitwise_and(k, W - 1)
    else:
        col = k % W
    valid_y = (col != (W - 1)).astype(jnp.float32)               # drop wrap-around pairs
    sum_y = jnp.sum(jnp.abs(fgy * wy) * valid_y)

    # 2 flow channels, mean over (N,1,H-1,W) and (N,1,H,W-1) respectively, then /2.
    inv_dx = 1.0 / (2.0 * N * (H - 1) * W)
    inv_dy = 1.0 / (2.0 * N * H * (W - 1))
    out_ref[0, 0] = sum_x * inv_dx + sum_y * inv_dy


# ----------------------------------------------------------------------------
# Wrapper: NCHW inputs (like PyTorch), free contiguous reshape to lane-dense layout
# ----------------------------------------------------------------------------
@jax.jit
def smooth_loss(flow, image, mask):
    """flow: (N, 2, H, W), image: (N, C, H, W), mask: (N, 1, H, W) -- NCHW like PyTorch."""
    N, FC, H, W = flow.shape
    C = image.shape[1]
    HW = H * W
    kernel = partial(_smooth_loss_kernel, H=H, W=W)
    out = pl.pallas_call(
        kernel,
        out_shape=jax.ShapeDtypeStruct((1, 1), jnp.float32),
        in_specs=[
            pl.BlockSpec(memory_space=pltpu.MemorySpace.VMEM),
            pl.BlockSpec(memory_space=pltpu.MemorySpace.VMEM),
            pl.BlockSpec(memory_space=pltpu.MemorySpace.VMEM),
        ],
        out_specs=pl.BlockSpec(memory_space=pltpu.MemorySpace.SMEM),
    )(
        flow.reshape(N, FC, HW).astype(jnp.float32),
        image.reshape(N, C, HW).astype(jnp.float32),
        mask.reshape(N, 1, HW).astype(jnp.float32),
    )
    return out[0, 0]


# ----------------------------------------------------------------------------
# Pure-JAX reference (mirrors the PyTorch module) for correctness check
# ----------------------------------------------------------------------------
def reference_smooth_loss(flow, image, mask):
    def gx(t, m):
        return (t[:, :, :-1, :] - t[:, :, 1:, :]) * m[:, :, 1:, :]

    def gy(t, m):
        return (t[:, :, :, :-1] - t[:, :, :, 1:]) * m[:, :, :, 1:]

    def one(flow_i):
        fgx_, fgy_ = gx(flow_i, mask), gy(flow_i, mask)
        igx_, igy_ = gx(image, mask), gy(image, mask)
        wx = jnp.exp(-jnp.mean(jnp.abs(igx_), axis=1, keepdims=True))
        wy = jnp.exp(-jnp.mean(jnp.abs(igy_), axis=1, keepdims=True))
        return jnp.mean(jnp.abs(fgx_ * wx)) + jnp.mean(jnp.abs(fgy_ * wy))

    total = one(flow[:, 0:1]) + one(flow[:, 1:2])
    return total / 2.0


if __name__ == "__main__":
    key = jax.random.PRNGKey(0)
    kf, ki, km = jax.random.split(key, 3)

    N, H, W = 2, 16, 16
    C = 3  # RGB image; flow has 2 channels (fixed by the module), mask has 1
    flow = jax.random.normal(kf, (N, 2, H, W), jnp.float32)
    image = jax.random.normal(ki, (N, C, H, W), jnp.float32)
    mask = (jax.random.uniform(km, (N, 1, H, W)) > 0.25).astype(jnp.float32)

    out = smooth_loss(flow, image, mask)
    out = jax.block_until_ready(out)

    ref = reference_smooth_loss(flow, image, mask)
    assert out.shape == ()
    assert jnp.allclose(out, ref, rtol=1e-4, atol=1e-6), (out, ref)

    print("KERNEL_OK")
</pallas_src>

<mosaic_0001>
module attributes {stable_mosaic.version = 11 : i64} {
  func.func @_smooth_loss_kernel(%arg0: memref<2x2x256xf32, #tpu.memory_space<vmem>>, %arg1: memref<2x3x256xf32, #tpu.memory_space<vmem>>, %arg2: memref<2x1x256xf32, #tpu.memory_space<vmem>>, %arg3: memref<1x1xf32, #tpu.memory_space<smem>>) attributes {dimension_semantics = [], scalar_prefetch = 0 : i64, scratch_operands = 0 : i64, tpu.core_type = #tpu.core_type<tc>} {
    %c0 = arith.constant 0 : index
    %c0_0 = arith.constant 0 : index
    %c0_1 = arith.constant 0 : index
    %0 = vector.load %arg0[%c0, %c0_0, %c0_1] : memref<2x2x256xf32, #tpu.memory_space<vmem>>, vector<2x2x256xf32>
    %c0_2 = arith.constant 0 : index
    %c0_3 = arith.constant 0 : index
    %c0_4 = arith.constant 0 : index
    %1 = vector.load %arg1[%c0_2, %c0_3, %c0_4] : memref<2x3x256xf32, #tpu.memory_space<vmem>>, vector<2x3x256xf32>
    %c0_5 = arith.constant 0 : index
    %c0_6 = arith.constant 0 : index
    %c0_7 = arith.constant 0 : index
    %2 = vector.load %arg2[%c0_5, %c0_6, %c0_7] : memref<2x1x256xf32, #tpu.memory_space<vmem>>, vector<2x1x256xf32>
    %3 = vector.extract_strided_slice %2 {offsets = [0, 0, 16], sizes = [2, 1, 240], strides = [1, 1, 1]} : vector<2x1x256xf32> to vector<2x1x240xf32>
    %4 = vector.extract_strided_slice %1 {offsets = [0, 0, 0], sizes = [2, 3, 240], strides = [1, 1, 1]} : vector<2x3x256xf32> to vector<2x3x240xf32>
    %5 = vector.extract_strided_slice %1 {offsets = [0, 0, 16], sizes = [2, 3, 240], strides = [1, 1, 1]} : vector<2x3x256xf32> to vector<2x3x240xf32>
    %6 = arith.subf %4, %5 : vector<2x3x240xf32>
    %7 = vector.broadcast %3 : vector<2x1x240xf32> to vector<2x3x240xf32>
    %8 = arith.mulf %6, %7 : vector<2x3x240xf32>
    %9 = math.absf %8 : vector<2x3x240xf32>
    %cst = arith.constant dense<0.000000e+00> : vector<2x240xf32>
    %10 = vector.multi_reduction <add>, %9, %cst [1] : vector<2x3x240xf32> to vector<2x240xf32>
    %11 = vector.shape_cast %10 : vector<2x240xf32> to vector<2x1x240xf32>
    %cst_8 = arith.constant 3.000000e+00 : f32
    %12 = vector.broadcast %cst_8 : f32 to vector<2x1x240xf32>
    %13 = arith.divf %11, %12 : vector<2x1x240xf32>
    %cst_9 = arith.constant 0.000000e+00 : f32
    %14 = vector.broadcast %cst_9 : f32 to vector<2x1x240xf32>
    %15 = arith.subf %14, %13 : vector<2x1x240xf32>
    %16 = math.exp %15 : vector<2x1x240xf32>
    %17 = vector.extract_strided_slice %0 {offsets = [0, 0, 0], sizes = [2, 2, 240], strides = [1, 1, 1]} : vector<2x2x256xf32> to vector<2x2x240xf32>
    %18 = vector.extract_strided_slice %0 {offsets = [0, 0, 16], sizes = [2, 2, 240], strides = [1, 1, 1]} : vector<2x2x256xf32> to vector<2x2x240xf32>
    %19 = arith.subf %17, %18 : vector<2x2x240xf32>
    %20 = vector.broadcast %3 : vector<2x1x240xf32> to vector<2x2x240xf32>
    %21 = arith.mulf %19, %20 : vector<2x2x240xf32>
    %22 = vector.broadcast %16 : vector<2x1x240xf32> to vector<2x2x240xf32>
    %23 = arith.mulf %21, %22 : vector<2x2x240xf32>
    %24 = math.absf %23 : vector<2x2x240xf32>
    %25 = vector.shape_cast %24 : vector<2x2x240xf32> to vector<1x2x2x240xf32>
    %cst_10 = arith.constant dense<0.000000e+00> : vector<1xf32>
    %26 = vector.multi_reduction <add>, %25, %cst_10 [1, 2, 3] : vector<1x2x2x240xf32> to vector<1xf32>
    %27 = vector.shape_cast %26 : vector<1xf32> to vector<1x1x1x1xf32>
    %28 = vector.extract %27[0, 0, 0, 0] : f32 from vector<1x1x1x1xf32>
    %29 = vector.extract_strided_slice %2 {offsets = [0, 0, 1], sizes = [2, 1, 255], strides = [1, 1, 1]} : vector<2x1x256xf32> to vector<2x1x255xf32>
    %30 = vector.extract_strided_slice %1 {offsets = [0, 0, 0], sizes = [2, 3, 255], strides = [1, 1, 1]} : vector<2x3x256xf32> to vector<2x3x255xf32>
    %31 = vector.extract_strided_slice %1 {offsets = [0, 0, 1], sizes = [2, 3, 255], strides = [1, 1, 1]} : vector<2x3x256xf32> to vector<2x3x255xf32>
    %32 = arith.subf %30, %31 : vector<2x3x255xf32>
    %33 = vector.broadcast %29 : vector<2x1x255xf32> to vector<2x3x255xf32>
    %34 = arith.mulf %32, %33 : vector<2x3x255xf32>
    %35 = math.absf %34 : vector<2x3x255xf32>
    %cst_11 = arith.constant dense<0.000000e+00> : vector<2x255xf32>
    %36 = vector.multi_reduction <add>, %35, %cst_11 [1] : vector<2x3x255xf32> to vector<2x255xf32>
    %37 = vector.shape_cast %36 : vector<2x255xf32> to vector<2x1x255xf32>
    %cst_12 = arith.constant 3.000000e+00 : f32
    %38 = vector.broadcast %cst_12 : f32 to vector<2x1x255xf32>
    %39 = arith.divf %37, %38 : vector<2x1x255xf32>
    %cst_13 = arith.constant 0.000000e+00 : f32
    %40 = vector.broadcast %cst_13 : f32 to vector<2x1x255xf32>
    %41 = arith.subf %40, %39 : vector<2x1x255xf32>
    %42 = math.exp %41 : vector<2x1x255xf32>
    %43 = vector.extract_strided_slice %0 {offsets = [0, 0, 0], sizes = [2, 2, 255], strides = [1, 1, 1]} : vector<2x2x256xf32> to vector<2x2x255xf32>
    %44 = vector.extract_strided_slice %0 {offsets = [0, 0, 1], sizes = [2, 2, 255], strides = [1, 1, 1]} : vector<2x2x256xf32> to vector<2x2x255xf32>
    %45 = arith.subf %43, %44 : vector<2x2x255xf32>
    %46 = vector.broadcast %29 : vector<2x1x255xf32> to vector<2x2x255xf32>
    %47 = arith.mulf %45, %46 : vector<2x2x255xf32>
    %48 = tpu.iota {dimensions = array<i32: 2>} : vector<1x1x255xi32>
    %c15_i32 = arith.constant 15 : i32
    %49 = vector.broadcast %c15_i32 : i32 to vector<1x1x255xi32>
    %50 = arith.andi %48, %49 : vector<1x1x255xi32>
    %c15_i32_14 = arith.constant 15 : i32
    %51 = vector.broadcast %c15_i32_14 : i32 to vector<1x1x255xi32>
    %52 = arith.cmpi ne, %50, %51 : vector<1x1x255xi32>
    %53 = arith.extui %52 : vector<1x1x255xi1> to vector<1x1x255xi32>
    %54 = arith.sitofp %53 : vector<1x1x255xi32> to vector<1x1x255xf32>
    %55 = vector.broadcast %42 : vector<2x1x255xf32> to vector<2x2x255xf32>
    %56 = arith.mulf %47, %55 : vector<2x2x255xf32>
    %57 = math.absf %56 : vector<2x2x255xf32>
    %58 = vector.broadcast %54 : vector<1x1x255xf32> to vector<2x2x255xf32>
    %59 = arith.mulf %57, %58 : vector<2x2x255xf32>
    %60 = vector.shape_cast %59 : vector<2x2x255xf32> to vector<1x2x2x255xf32>
    %cst_15 = arith.constant dense<0.000000e+00> : vector<1xf32>
    %61 = vector.multi_reduction <add>, %60, %cst_15 [1, 2, 3] : vector<1x2x2x255xf32> to vector<1xf32>
    %62 = vector.shape_cast %61 : vector<1xf32> to vector<1x1x1x1xf32>
    %63 = vector.extract %62[0, 0, 0, 0] : f32 from vector<1x1x1x1xf32>
    %cst_16 = arith.constant 0.00104166672 : f32
    %64 = arith.mulf %28, %cst_16 : f32
    %cst_17 = arith.constant 0.00104166672 : f32
    %65 = arith.mulf %63, %cst_17 : f32
    %66 = arith.addf %64, %65 : f32
    %c0_18 = arith.constant 0 : index
    %c0_19 = arith.constant 0 : index
    %67 = memref.load %arg3[%c0_18, %c0_19] : memref<1x1xf32, #tpu.memory_space<smem>>
    memref.store %66, %arg3[%c0_18, %c0_19] : memref<1x1xf32, #tpu.memory_space<smem>>
    return
  }
}

</mosaic_0001>

<bundles_post_ra>
// kernel: smooth_loss.1
= control target key start
LH: loop header
LB: loop body
LE: loop exit
PB: predicated region body
PF: predicated region fallthrough
CT: control target
= control target key end

     0   :  { %v38_v2 = vlaneseq  ;;  %s477_s16 = smov 127   ;;  %s478_s17 = smov 112   ;;  %s642_s0 = inlined_call_operand.vmem [shape: f32[2,2,256], index: 0, kind: input, shape index: {}]   ;;  %s643_s1 = inlined_call_operand.vmem [shape: f32[2,3,256], index: 1, kind: input, shape index: {}]   ;;  %s644_s2 = inlined_call_operand.vmem [shape: f32[2,1,256], index: 2, kind: input, shape index: {}]   ;;  %s645_s3 = inlined_call_operand.hbm [shape: f32[1,1], index: 3, kind: output, shape index: {}]  }
   0x1   :  { %v505_v0 = vld [vmem:[%s643_s1] sm:$0x77]  ;;  %v510_v1 = vld [vmem:[%s643_s1 + $0x8] sm:$0x77] }
   0x2   :  { %229 = vrot.lane.b32.xlu0 %v505_v0, %s477_s16  ;;  %25 = vrot.lane.b32.xlu1 %v510_v1, %s478_s17  ;;  %v39_v3 = vshrl.u32 %v38_v2, 7  ;;  %v19_v4 = vld [vmem:[%s644_s2] sm:$0x3]  ;;  %v20_v5 = vld [vmem:[%s644_s2 + $0x2] sm:$0x3] }
   0x3   :  { %8 = vsyncpa [#allocation3], 0  ;;  %v479_v8 = vmov 1983009808   ;;  %v535_v18 = vld [vmem:[%s642_s0] sm:$0xf] }
   0x4   :  { %v40_v6 = vsub.s32 0, %v39_v3  ;;  %v44_v7 = vsub.s32 1, %v39_v3  ;;  %v138_v9 = vunpack.c.l.s4 %v479_v8  ;;  %v547_v20 = vld [vmem:[%s642_s0 + $0x4] sm:$0xf]  ;;  %vm235_vm0 = vcmask 1039360   ;;  %s465_s30 = scalar_lea.hbm %s645_s3, 16 }
   0x5   :  { %vm29_vm1 = vcmask 916480   ;;  %vm76_vm2 = vcmask 1042432   ;;  %v566_v46 = vand.u32 127, %v38_v2  ;;  %vm269_vm3 = vcmask 1034240   ;;  %p466_p0 = scmp.ne.s32.totalorder %s645_s3, %s465_s30  ;;  %p469_p1 = scmp.lt.u32.totalorder %s465_s30, %s645_s3 }
   0x6   :  { %23 = vrot.lane.b32.xlu0 %v505_v0, %s478_s17  ;;  %v41_v10 = vrot.slane %v19_v4, %v40_v6  ;;  %v45_v11 = vrot.slane %v19_v4, %v44_v7  ;;  %v49_v12 = vrot.slane %v20_v5, %v40_v6  ;;  %v53_v13 = vrot.slane %v20_v5, %v44_v7 }
   0x7   :  { %v139_v15 = vunpack.c.0.s8 %v138_v9  ;;  %vm84_vm4 = vcmask 911360   ;;  %v574_v60 = vadd.s32 128, %v566_v46  ;;  %vm211_vm7 = vcmask 1041408   ;;  %p471_p2 = pnand %p469_p1, %p466_p0 }
   0x8   :  { %v54_v14 = vcombine.low %v41_v10, %v45_v11  ;;  %v55_v16 = vcombine.low %v49_v12, %v53_v13  ;;  %vm404_vm8 = vcmask 1033216   ;;  %vm213_vm9 = vcmask 910336  }
   0x9   :  { %v528_v17 = vsub.s32 %v139_v15, %v39_v3 }
   0xa   :  { %231 = vrot.lane.b32.xlu0 %v510_v1, %s477_s16  ;;  %242 = vrot.lane.b32.xlu1 %v54_v14, %s477_s16 }
   0xb   :  { %v143_v19 = vrot.slane %v54_v14, %v528_v17  ;;  %v150_v21 = vrot.slane %v55_v16, %v528_v17 }
   0xe   :  { %244 = vrot.lane.b32.xlu0 %v55_v16, %s477_s16  ;;  %56 = vrot.lane.b32.xlu1 %v54_v14, %s478_s17 }
  0x12   :  { %307 = vrot.lane.b32.xlu0 %v535_v18, %s477_s16  ;;  %58 = vrot.lane.b32.xlu1 %v55_v16, %s478_s17 }
  0x16   :  { %319 = vrot.lane.b32.xlu0 %v143_v19, %s477_s16  ;;  %125 = vrot.lane.b32.xlu1 %v535_v18, %s478_s17 }
  0x1a   :  { %309 = vrot.lane.b32.xlu0 %v547_v20, %s477_s16  ;;  %151 = vrot.lane.b32.xlu1 %v143_v19, %s478_s17 }
  0x1e   :  { %321 = vrot.lane.b32.xlu0 %v150_v21, %s477_s16  ;;  %127 = vrot.lane.b32.xlu1 %v547_v20, %s478_s17 }
  0x22   :  { %153 = vrot.lane.b32.xlu1 %v150_v21, %s478_s17 }
  0x74   :  { %v230_v22 = vpop.permute.xlu0 %229  ;;  %v26_v25 = vpop.permute.xlu1 %25 }
  0x75   :  { %v233_v23 = vrot.slane %v230_v22, 4  ;;  %v28_v34 = vrot.slane %v26_v25, 4 }
  0x77   :  { %v236_v26 = vsel %vm235_vm0, %v230_v22, %v233_v23  ;;  %v31_v47 = vsel %vm29_vm1, %v26_v25, %v28_v34 }
  0x78   :  { %v24_v24 = vpop.permute.xlu0 %23  ;;  %v240_v32 = vsub.f32 %v505_v0, %v236_v26  ;;  %v35_v57 = vsub.f32 %v510_v1, %v31_v47 }
  0x79   :  { %v27_v27 = vrot.slane %v24_v24, 4 }
  0x7b   :  { %v30_v35 = vsel %vm29_vm1, %v24_v24, %v27_v27  ;;  %v334_v24 = vand.u32 15, %v566_v46 }
  0x7c   :  { %v232_v28 = vpop.permute.xlu0 %231  ;;  %v243_v30 = vpop.permute.xlu1 %242  ;;  %v34_v43 = vsub.f32 %v505_v0, %v30_v35 }
  0x7d   :  { %v234_v29 = vrot.slane %v232_v28, 4  ;;  %v246_v31 = vrot.slane %v243_v30, 4  ;;  %vm592_vm5 = vcmp.ne.s32.totalorder %v334_v24, 15 }
  0x7f   :  { %v237_v33 = vsel %vm235_vm0, %v232_v28, %v234_v29  ;;  %v248_v37 = vsel %vm235_vm0, %v243_v30, %v246_v31 }
  0x80   :  { %v241_v36 = vsub.f32 %v510_v1, %v237_v33  ;;  %v245_v38 = vpop.permute.xlu0 %244  ;;  %v252_v39 = vmul.f32 %v248_v37, %v240_v32  ;;  %v57_v41 = vpop.permute.xlu1 %56 }
  0x81   :  { %v247_v40 = vrot.slane %v245_v38, 4  ;;  %v60_v42 = vrot.slane %v57_v41, 4 }
  0x82   :  { %v254_v44 = vand.u32 2147483647, %v252_v39 }
  0x83   :  { %v249_v45 = vsel %vm235_vm0, %v245_v38, %v247_v40  ;;  %v62_v49 = vsel %vm29_vm1, %v57_v41, %v60_v42 }
  0x84   :  { %v253_v48 = vmul.f32 %v249_v45, %v241_v36  ;;  %v258_v50 = vcombine.high %v254_v44, %v254_v44  ;;  %v262_v51 = vsel %vm76_vm2, %v254_v44, 0.0  ;;  %v66_v52 = vmul.f32 %v62_v49, %v34_v43  ;;  %v59_v53 = vpop.permute.xlu1 %58  ;;  %v581_v19 = vpop.permute.xlu0 %307 }
  0x85   :  { %v263_v54 = vrot.slane %v262_v51, 4  ;;  %v61_v56 = vrot.slane %v59_v53, 4 }
  0x86   :  { %v255_v55 = vand.u32 2147483647, %v253_v48  ;;  %v270_v58 = vsel %vm269_vm3, %v258_v50, 0.0  ;;  %v68_v59 = vand.u32 2147483647, %v66_v52 }
  0x87   :  { %v264_v61 = vadd.f32 %v263_v54, %v262_v51  ;;  %v271_v62 = vrot.slane %v270_v58, 4  ;;  %v63_v5 = vsel %vm29_vm1, %v59_v53, %v61_v56 }
  0x88   :  { %v259_v63 = vcombine.high %v255_v55, %v255_v55  ;;  %v277_v0 = vsel %vm76_vm2, %v255_v55, 0.0  ;;  %v72_v3 = vcombine.high %v68_v59, %v68_v59  ;;  %v77_v4 = vsel %vm76_vm2, %v68_v59, 0.0  ;;  %v586_v45 = vpop.permute.xlu0 %319  ;;  %v126_v59 = vpop.permute.xlu1 %125 }
  0x89   :  { %v278_v2 = vrot.slane %v277_v0, 4  ;;  %v265_v6 = vrot.slane %v264_v61, 2  ;;  %v272_v7 = vadd.f32 %v271_v62, %v270_v58  ;;  %v78_v8 = vrot.slane %v77_v4, 4 }
  0x8a   :  { %v284_v1 = vsel %vm269_vm3, %v259_v63, 0.0  ;;  %v85_v11 = vsel %vm84_vm4, %v72_v3, 0.0  ;;  %v67_v12 = vmul.f32 %v63_v5, %v35_v57 }
  0x8b   :  { %v279_v9 = vadd.f32 %v278_v2, %v277_v0  ;;  %v285_v10 = vrot.slane %v284_v1, 4  ;;  %v266_v13 = vadd.f32 %v265_v6, %v264_v61  ;;  %v273_v14 = vrot.slane %v272_v7, 2 }
  0x8c   :  { %v79_v15 = vadd.f32 %v78_v8, %v77_v4  ;;  %v86_v16 = vrot.slane %v85_v11, 4  ;;  %v69_v23 = vand.u32 2147483647, %v67_v12  ;;  %v310_v8 = vpop.permute.xlu0 %309 }
  0x8d   :  { %v280_v21 = vrot.slane %v279_v9, 2  ;;  %v286_v22 = vadd.f32 %v285_v10, %v284_v1  ;;  %v267_v25 = vrot.slane %v266_v13, 1  ;;  %v274_v26 = vadd.f32 %v273_v14, %v272_v7 }
  0x8e   :  { %v80_v27 = vrot.slane %v79_v15, 2  ;;  %v87_v28 = vadd.f32 %v86_v16, %v85_v11  ;;  %v73_v31 = vcombine.high %v69_v23, %v69_v23  ;;  %v92_v32 = vsel %vm76_vm2, %v69_v23, 0.0  ;;  %v152_v23 = vpop.permute.xlu1 %151 }
  0x8f   :  { %v281_v29 = vadd.f32 %v280_v21, %v279_v9  ;;  %v287_v30 = vrot.slane %v286_v22, 2  ;;  %v268_v33 = vadd.f32 %v267_v25, %v266_v13  ;;  %v275_v34 = vrot.slane %v274_v26, 1 }
  0x90   :  { %v81_v35 = vadd.f32 %v80_v27, %v79_v15  ;;  %v88_v36 = vrot.slane %v87_v28, 2  ;;  %v93_v39 = vrot.slane %v92_v32, 4  ;;  %v99_v40 = vsel %vm84_vm4, %v73_v31, 0.0 }
  0x91   :  { %v282_v37 = vrot.slane %v281_v29, 1  ;;  %v288_v38 = vadd.f32 %v287_v30, %v286_v22  ;;  %v276_v41 = vadd.f32 %v275_v34, %v274_v26  ;;  %v291_v42 = vmul.f32 0.33333334, %v268_v33  ;;  %v322_v30 = vpop.permute.xlu0 %321 }
  0x92   :  { %v82_v43 = vrot.slane %v81_v35, 1  ;;  %v89_v44 = vadd.f32 %v88_v36, %v87_v28  ;;  %v94_v49 = vadd.f32 %v93_v39, %v92_v32  ;;  %v100_v50 = vrot.slane %v99_v40, 4  ;;  %v128_v46 = vpop.permute.xlu1 %127 }
  0x93   :  { %v283_v47 = vadd.f32 %v282_v37, %v281_v29  ;;  %v289_v48 = vrot.slane %v288_v38, 1  ;;  %v292_v51 = vmul.f32 0.33333334, %v276_v41  ;;  %v295_v52 = vsub.f32 0.0, %v291_v42 }
  0x94   :  { %v83_v53 = vadd.f32 %v82_v43, %v81_v35  ;;  %v90_v54 = vrot.slane %v89_v44, 1  ;;  %v95_v57 = vrot.slane %v94_v49, 2  ;;  %v101_v58 = vadd.f32 %v100_v50, %v99_v40 }
  0x95   :  { %v290_v55 = vadd.f32 %v289_v48, %v288_v38  ;;  %v293_v56 = vmul.f32 0.33333334, %v283_v47  ;;  %v296_v61 = vsub.f32 0.0, %v292_v51  ;;  %v299_v62 = vmul.f32 1.442695, %v295_v52 }
  0x96   :  { %v91_v63 = vadd.f32 %v90_v54, %v89_v44  ;;  %v107_v0 = vmul.f32 0.33333334, %v83_v53  ;;  %v96_v4 = vadd.f32 %v95_v57, %v94_v49  ;;  %v102_v5 = vrot.slane %v101_v58, 2 }
  0x97   :  { %v294_v2 = vmul.f32 0.33333334, %v290_v55  ;;  %v297_v3 = vsub.f32 0.0, %v293_v56  ;;  %449 = vpow2.f32 %v299_v62  ;;  %v301_v6 = vmul.f32 1.442695, %v296_v61  ;;  %v154_v62 = vpop.permute.xlu1 %153 }
  0x98   :  { %v108_v7 = vmul.f32 0.33333334, %v91_v63  ;;  %v111_v1 = vsub.f32 0.0, %v107_v0  ;;  %v97_v11 = vrot.slane %v96_v4, 1  ;;  %v103_v12 = vadd.f32 %v102_v5, %v101_v58 }
  0x99   :  { %v298_v9 = vsub.f32 0.0, %v294_v2  ;;  %v303_v10 = vmul.f32 1.442695, %v297_v3  ;;  %451 = vpow2.f32 %v301_v6  ;;  %v335_v15 = vand.u32 15, %v574_v60 }
  0x9a   :  { %v112_v13 = vsub.f32 0.0, %v108_v7  ;;  %v115_v14 = vmul.f32 1.442695, %v111_v1  ;;  %v98_v21 = vadd.f32 %v97_v11, %v96_v4  ;;  %v104_v22 = vrot.slane %v103_v12, 1 }
  0x9b   :  { %453 = vpow2.f32 %v303_v10  ;;  %v305_v16 = vmul.f32 1.442695, %v298_v9  ;;  %v311_v26 = vrot.slane %v581_v19, 2  ;;  %v312_v60 = vrot.slane %v310_v8, 2 }
  0x9c   :  { %455 = vpow2.f32 %v115_v14  ;;  %v117_v25 = vmul.f32 1.442695, %v112_v13  ;;  %v105_v27 = vadd.f32 %v104_v22, %v103_v12  ;;  %v109_v28 = vmul.f32 0.33333334, %v98_v21 }
  0x9d   :  { %457 = vpow2.f32 %v305_v16  ;;  %v129_v33 = vrot.slane %v126_v59, 2  ;;  %vm337_vm6 = vcmp.ne.s32.totalorder %v335_v15, 15  ;;  %v313_v34 = vsel %vm235_vm0, %v581_v19, %v311_v26 }
  0x9e   :  { %459 = vpow2.f32 %v117_v25  ;;  %v110_v31 = vmul.f32 0.33333334, %v105_v27  ;;  %v113_v32 = vsub.f32 0.0, %v109_v28  ;;  %v323_v35 = vrot.slane %v586_v45, 2 }
  0x9f   :  { %v314_v38 = vsel %vm235_vm0, %v310_v8, %v312_v60  ;;  %v324_v24 = vrot.slane %v322_v30, 2  ;;  %v480_v40 = vmov 0.0   ;;  %v317_v44 = vsub.f32 %v535_v18, %v313_v34 }
  0xa0   :  { %v114_v36 = vsub.f32 0.0, %v110_v31  ;;  %v119_v37 = vmul.f32 1.442695, %v113_v32  ;;  %v438_v41 = vsel %vm592_vm5, 1.0, %v480_v40  ;;  %v439_v42 = vsel %vm337_vm6, 1.0, %v480_v40 }
  0xa1   :  { %v450_v39 = vpop.eup %449  ;;  %v131_v47 = vsel %vm29_vm1, %v126_v59, %v129_v33  ;;  %v325_v48 = vsel %vm235_vm0, %v586_v45, %v323_v35  ;;  %v155_v49 = vrot.slane %v152_v23, 2  ;;  %v318_v50 = vsub.f32 %v547_v20, %v314_v38 }
  0xa2   :  { %v121_v43 = vmul.f32 1.442695, %v114_v36  ;;  %461 = vpow2.f32 %v119_v37  ;;  %v370_v53 = vcombine.low %v438_v41, %v439_v42  ;;  %v326_v54 = vsel %vm235_vm0, %v322_v30, %v324_v24 }
  0xa3   :  { %v452_v19 = vpop.eup %451  ;;  %v135_v57 = vsub.f32 %v535_v18, %v131_v47  ;;  %v329_v59 = vmul.f32 %v325_v48, %v317_v44  ;;  %v130_v61 = vrot.slane %v128_v46, 2  ;;  %v157_v45 = vsel %vm29_vm1, %v152_v23, %v155_v49 }
  0xa4   :  { %463 = vpow2.f32 %v121_v43  ;;  %v346_v52 = vcombine.low %v450_v39, %v452_v19  ;;  %v330_v2 = vmul.f32 %v326_v54, %v318_v50  ;;  %v377_v3 = vrot.slane %v370_v53, %v528_v17 }
  0xa5   :  { %v454_v51 = vpop.eup %453  ;;  %v156_v7 = vrot.slane %v154_v62, 2  ;;  %v161_v8 = vmul.f32 %v157_v45, %v135_v57  ;;  %v132_v9 = vsel %vm29_vm1, %v128_v46, %v130_v61 }
  0xa6   :  { %v456_v55 = vpop.eup %455  ;;  %v353_v58 = vrot.slane %v346_v52, %v528_v17  ;;  %v136_v14 = vsub.f32 %v547_v20, %v132_v9 }
  0xa7   :  { %v458_v56 = vpop.eup %457  ;;  %v158_v22 = vsel %vm29_vm1, %v154_v62, %v156_v7 }
  0xa8   :  { %v460_v63 = vpop.eup %459  ;;  %v354_v0 = vcombine.low %v454_v51, %v458_v56  ;;  %v364_v4 = vmul.f32 %v353_v58, %v329_v59  ;;  %v162_v60 = vmul.f32 %v158_v22, %v136_v14 }
  0xa9   :  { %v167_v5 = vcombine.low %v456_v55, %v460_v63 }
  0xaa   :  { %v361_v6 = vrot.slane %v354_v0, %v528_v17  ;;  %v366_v1 = vand.u32 2147483647, %v364_v4 }
  0xab   :  { %v174_v18 = vrot.slane %v167_v5, %v528_v17 }
  0xac   :  { %v365_v10 = vmul.f32 %v361_v6, %v330_v2  ;;  %v379_v11 = vmul.f32 %v377_v3, %v366_v1  ;;  %v462_v13 = vpop.eup %461 }
  0xad   :  { %v185_v12 = vmul.f32 %v174_v18, %v161_v8 }
  0xae   :  { %v367_v15 = vand.u32 2147483647, %v365_v10  ;;  %v464_v16 = vpop.eup %463  ;;  %v389_v23 = vrot.slane %v379_v11, %v528_v17 }
  0xaf   :  { %v187_v21 = vand.u32 2147483647, %v185_v12  ;;  %v175_v26 = vcombine.low %v462_v13, %v464_v16 }
  0xb0   :  { %v380_v25 = vmul.f32 %v377_v3, %v367_v15  ;;  %v390_v28 = vcombine.high %v389_v23, %v389_v23  ;;  %v403_v20 = vsel %vm211_vm7, %v389_v23, 0.0 }
  0xb1   :  { %v197_v27 = vrot.slane %v187_v21, %v528_v17  ;;  %v182_v29 = vrot.slane %v175_v26, %v528_v17 }
  0xb2   :  { %v397_v30 = vrot.slane %v380_v25, %v528_v17  ;;  %v405_v31 = vsel %vm404_vm8, %v390_v28, 0.0 }
  0xb3   :  { %v198_v32 = vcombine.high %v197_v27, %v197_v27  ;;  %v186_v33 = vmul.f32 %v182_v29, %v162_v60  ;;  %v406_v35 = vadd.f32 %v405_v31, %v403_v20  ;;  %v212_v39 = vsel %vm211_vm7, %v197_v27, 0.0 }
  0xb4   :  { %v398_v34 = vcombine.high %v397_v30, %v397_v30  ;;  %v407_v36 = vsel %vm211_vm7, %v397_v30, 0.0 }
  0xb5   :  { %v214_v37 = vsel %vm213_vm9, %v198_v32, 0.0  ;;  %v188_v38 = vand.u32 2147483647, %v186_v33  ;;  %v408_v46 = vadd.f32 %v407_v36, %v406_v35 }
  0xb6   :  { %v409_v24 = vsel %vm404_vm8, %v398_v34, 0.0  ;;  %v215_v40 = vadd.f32 %v214_v37, %v212_v39 }
  0xb7   :  { %v410_v41 = vadd.f32 %v409_v24, %v408_v46  ;;  %v205_v42 = vrot.slane %v188_v38, %v528_v17 }
  0xb9   :  { %411 = vadd.xlane.f32.xlu1 %v410_v41  ;;  %v206_v43 = vcombine.high %v205_v42, %v205_v42  ;;  %v216_v44 = vsel %vm211_vm7, %v205_v42, 0.0 }
  0xba   :  { %v217_v47 = vadd.f32 %v216_v44, %v215_v40 }
  0xbb   :  { %v218_v19 = vsel %vm213_vm9, %v206_v43, 0.0 }
  0xbc   :  { %v219_v48 = vadd.f32 %v218_v19, %v217_v47 }
  0xbe   :  { %220 = vadd.xlane.f32.xlu0 %v219_v48 }
 0x146   :  { %v412_v49 = vpop.xlane.xlu1 %411 }
 0x147   :  { %v413_v50 = vrot.slane %v412_v49, 4 }
 0x149   :  { %v414_v51 = vadd.f32 %v413_v50, %v412_v49 }
 0x14b   :  { %v415_v52 = vrot.slane %v414_v51, 2  ;;  %v221_v53 = vpop.xlane.xlu0 %220 }
 0x14c   :  { %v222_v54 = vrot.slane %v221_v53, 4 }
 0x14d   :  { %v416_v56 = vadd.f32 %v415_v52, %v414_v51 }
 0x14e   :  { %v223_v55 = vadd.f32 %v222_v54, %v221_v53 }
 0x14f   :  { %v417_v17 = vrot.slane %v416_v56, 1 }
 0x150   :  { %v224_v57 = vrot.slane %v223_v55, 2 }
 0x151   :  { %v418_v62 = vadd.f32 %v417_v17, %v416_v56 }
 0x152   :  { %v225_v58 = vadd.f32 %v224_v57, %v223_v55 }
 0x154   :  { %v226_v59 = vrot.slane %v225_v58, 1 }
 0x156   :  { %v227_v61 = vadd.f32 %v226_v59, %v225_v58 }
 0x158   :  { %440 = vpush %v227_v61 }
 0x159   :  { %442 = vpush %v418_v62 }
 0x189   :  { %s441_s0 = spop %440 }
 0x18a   :  { %s420_s24 = smul.f32 0.0010416667, %s441_s0  ;;  %s443_s25 = spop %442 }
 0x18b   :  { %s421_s26 = smul.f32 0.0010416667, %s443_s25 }
 0x18d   :  { %s422_s27 = sadd.f32 %s421_s26, %s420_s24 }
 0x18f   :  { %424 = sst [smem:[#allocation2]] %s422_s27 }
 0x190   :  { %474 = shalt.err (!%p471_p2)
}
 0x191   :  { %s481_s8 = smov [#allocation2]  }
 0x192   :  { %432 = dma.smem_to_hbm %s481_s8, 16, %s645_s3, [#allocation3]  }
 0x193   :  { %475 = dma.done.wait [#allocation3], 16  }
 0x194   :  { %476 = vsyncadd [#allocation3], 4294967280 }
 0x195   :  { %436 = sfence }
 0x196   :  { %437 = vsyncpa [#allocation3], 1 }

</bundles_post_ra>
